<compile_context>
chip_gen: v6e
topology: v6e:2x2x1
jax: 0.10.0
libtpu: 0.0.40
codegen_flags: <defaults>
</compile_context>

<pallas_src>
import jax
import jax.numpy as jnp
from jax.experimental import pallas as pl
from jax.experimental.pallas import tpu as pltpu


def _round_up(x: int, m: int) -> int:
    return ((x + m - 1) // m) * m


def _default_tile_n() -> int:
    """Per-chip output-tile width (lane-dense multiple of 128)."""
    try:
        kind = jax.devices()[0].device_kind.lower()
    except Exception:  # pragma: no cover - defensive fallback
        return 2048
    # v5e: 16 MiB default scoped VMEM and ~0.8 TB/s HBM -> keep 2048.
    if "v5 lite" in kind or "v5e" in kind or "v5litepod" in kind:
        return 2048
    # v6e / v7x: 32 MiB default scoped VMEM, much faster HBM -> 4096.
    return 4096


def generator_kernel(x_ref, w1_ref, b1_ref, w2_ref, b2_ref, o_ref):
    # Fused MLP hot path: two bf16 MXU matmuls (f32 accumulate) + VPU relu
    # + EUP tanh, all on VMEM tiles.
    x = x_ref[...].astype(jnp.bfloat16)                        # (tb, input_dim)
    h = jnp.dot(x, w1_ref[...], preferred_element_type=jnp.float32)
    h = jnp.maximum(h + b1_ref[...], 0.0)                      # ReLU(inplace)
    y = jnp.dot(h.astype(jnp.bfloat16), w2_ref[...],
                preferred_element_type=jnp.float32)
    y = y + b2_ref[...]
    o_ref[...] = jnp.tanh(y).astype(o_ref.dtype)


def prepare_generator_params(w1, b1, w2, b2):
    """One-time weight prep (hoisted out of the per-call forward path).

    w1: (input_dim, hidden), b1: (hidden,), w2: (hidden, out_dim), b2: (out_dim,)
    (weights stored already transposed w.r.t. nn.Linear's (out, in) layout).
    Returns operands in the exact dtypes/layouts the kernel streams:
    bf16 weights for the MXU, f32 (1, n) bias rows for the epilogue.
    """
    return (w1.astype(jnp.bfloat16),
            b1.reshape(1, -1).astype(jnp.float32),
            w2.astype(jnp.bfloat16),
            b2.reshape(1, -1).astype(jnp.float32))


def generator_forward(x, params, *, tile_b=256, tile_n=None,
                      out_dtype=jnp.float32):
    """x: (B, input_dim) f32 -> (B, max_length*vocab_size) `out_dtype`.

    `params` must come from `prepare_generator_params` (prep is done once,
    not per call).
    """
    w1_p, b1_p, w2_p, b2_p = params
    B, input_dim = x.shape
    hidden, out_dim = w2_p.shape
    assert w1_p.shape == (input_dim, hidden)
    assert hidden % 128 == 0, "hidden=256 in the reference module"

    if tile_n is None:
        tile_n = _default_tile_n()

    # Tile sizes: batch tile up to tile_b rows (multiple of 8 sublanes),
    # output tile up to tile_n lanes (multiple of 128).  cdiv grids handle
    # ragged edges via partial blocks -> no wrapper-side padding or slicing.
    tb = min(tile_b, _round_up(B, 8))
    tn = min(tile_n, _round_up(out_dim, 128))
    grid = (pl.cdiv(B, tb), pl.cdiv(out_dim, tn))

    out_bytes = jnp.dtype(out_dtype).itemsize
    cost = pl.CostEstimate(
        flops=2 * B * (input_dim * hidden + hidden * out_dim),
        transcendentals=B * out_dim,
        bytes_accessed=(x.size * 4 + w1_p.size * 2 + b1_p.size * 4
                        + w2_p.size * 2 + b2_p.size * 4
                        + B * out_dim * out_bytes),
    )

    return pl.pallas_call(
        generator_kernel,
        out_shape=jax.ShapeDtypeStruct((B, out_dim), out_dtype),
        grid_spec=pl.GridSpec(
            grid=grid,
            in_specs=[
                # Batch tile of x; constant across the (inner) N axis.
                pl.BlockSpec((tb, input_dim), lambda i, j: (i, 0)),
                # W1 / b1 fully resident (constant index_map -> DMA'd once).
                pl.BlockSpec((input_dim, hidden), lambda i, j: (0, 0)),
                pl.BlockSpec((1, hidden), lambda i, j: (0, 0)),
                # W2 / b2 streamed tile-by-tile along the output dimension.
                pl.BlockSpec((hidden, tn), lambda i, j: (0, j)),
                pl.BlockSpec((1, tn), lambda i, j: (0, j)),
            ],
            out_specs=pl.BlockSpec((tb, tn), lambda i, j: (i, j)),
        ),
        compiler_params=pltpu.CompilerParams(
            dimension_semantics=("parallel", "parallel"),
        ),
        cost_estimate=cost,
    )(x, w1_p, b1_p, w2_p, b2_p)


def init_generator_params(key, input_dim, max_length, vocab_size):
    """Deterministic init mirroring nn.Linear's U(-1/sqrt(fan_in), 1/sqrt(fan_in))."""
    out_dim = max_length * vocab_size
    hidden = 256
    k1, k2, k3, k4 = jax.random.split(key, 4)
    lim1 = 1.0 / jnp.sqrt(input_dim)
    lim2 = 1.0 / jnp.sqrt(hidden)
    w1 = jax.random.uniform(k1, (input_dim, hidden), jnp.float32, -lim1, lim1)
    b1 = jax.random.uniform(k2, (hidden,), jnp.float32, -lim1, lim1)
    w2 = jax.random.uniform(k3, (hidden, out_dim), jnp.float32, -lim2, lim2)
    b2 = jax.random.uniform(k4, (out_dim,), jnp.float32, -lim2, lim2)
    return w1, b1, w2, b2


if __name__ == "__main__":
    # Small shapes consistent with the module's forward:
    #   input_dim=32 latent, max_length=8, vocab_size=16 -> output_dim=128
    batch, input_dim, max_length, vocab_size = 16, 32, 8, 16

    key = jax.random.PRNGKey(0)
    k_x, k_p = jax.random.split(key)
    x = jax.random.normal(k_x, (batch, input_dim), jnp.float32)
    w1, b1, w2, b2 = init_generator_params(k_p, input_dim, max_length, vocab_size)

    # One-time weight prep (would be done at module-init time in training).
    params = prepare_generator_params(w1, b1, w2, b2)
    params = jax.block_until_ready(params)

    y = generator_forward(x, params)
    jax.block_until_ready(y)
    assert y.shape == (batch, max_length * vocab_size)
    assert y.dtype == jnp.float32

    # bf16-matched pure-JAX reference (same operand precision as the kernel).
    h_ref = jnp.maximum(
        jnp.dot(x.astype(jnp.bfloat16), w1.astype(jnp.bfloat16),
                preferred_element_type=jnp.float32) + b1, 0.0)
    y_ref_bf16 = jnp.tanh(
        jnp.dot(h_ref.astype(jnp.bfloat16), w2.astype(jnp.bfloat16),
                preferred_element_type=jnp.float32) + b2)
    assert jnp.allclose(y, y_ref_bf16, atol=1e-2, rtol=1e-2)

    # Loose check against the full-f32 PyTorch-equivalent math.
    y_ref_f32 = jnp.tanh(jnp.maximum(x @ w1 + b1, 0.0) @ w2 + b2)
    assert jnp.allclose(y, y_ref_f32, atol=8e-2, rtol=8e-2)

    print("KERNEL_OK")
</pallas_src>

<mosaic_0001>
module attributes {stable_mosaic.version = 11 : i64} {
  func.func @generator_kernel(%arg0: i32, %arg1: i32, %arg2: memref<16x32xf32, #tpu.memory_space<vmem>>, %arg3: memref<32x256xbf16, #tpu.memory_space<vmem>>, %arg4: memref<1x256xf32, #tpu.memory_space<vmem>>, %arg5: memref<256x128xbf16, #tpu.memory_space<vmem>>, %arg6: memref<1x128xf32, #tpu.memory_space<vmem>>, %arg7: memref<16x128xf32, #tpu.memory_space<vmem>>) attributes {dimension_semantics = [#tpu.dimension_semantics<parallel>, #tpu.dimension_semantics<parallel>], iteration_bounds = array<i64: 1, 1>, scalar_prefetch = 0 : i64, scratch_operands = 0 : i64, tpu.core_type = #tpu.core_type<tc>, window_params = [{transform_indices = @transform_0, window_bounds = array<i64: 16, 32>}, {pipeline_mode = #tpu.pipeline_mode<synchronous>, transform_indices = @transform_1, window_bounds = array<i64: 32, 256>}, {pipeline_mode = #tpu.pipeline_mode<synchronous>, transform_indices = @transform_2, window_bounds = array<i64: 1, 256>}, {transform_indices = @transform_3, window_bounds = array<i64: 256, 128>}, {transform_indices = @transform_4, window_bounds = array<i64: 1, 128>}, {transform_indices = @transform_5, window_bounds = array<i64: 16, 128>}]} {
    %c0 = arith.constant 0 : index
    %c0_0 = arith.constant 0 : index
    %0 = vector.load %arg2[%c0, %c0_0] : memref<16x32xf32, #tpu.memory_space<vmem>>, vector<16x32xf32>
    %1 = arith.truncf %0 : vector<16x32xf32> to vector<16x32xbf16>
    %c0_1 = arith.constant 0 : index
    %c0_2 = arith.constant 0 : index
    %2 = vector.load %arg3[%c0_1, %c0_2] : memref<32x256xbf16, #tpu.memory_space<vmem>>, vector<32x256xbf16>
    %cst = arith.constant dense<0.000000e+00> : vector<16x256xf32>
    %3 = tpu.matmul %1, %2, %cst {dimension_numbers = #tpu.dot_dimension_numbers<[1], [0], [0], [1], [0, 0, 1, 1], [], []>} : vector<16x32xbf16>, vector<32x256xbf16>, vector<16x256xf32> -> vector<16x256xf32>
    %c0_3 = arith.constant 0 : index
    %c0_4 = arith.constant 0 : index
    %4 = vector.load %arg4[%c0_3, %c0_4] : memref<1x256xf32, #tpu.memory_space<vmem>>, vector<1x256xf32>
    %5 = vector.broadcast %4 : vector<1x256xf32> to vector<16x256xf32>
    %6 = arith.addf %3, %5 : vector<16x256xf32>
    %cst_5 = arith.constant 0.000000e+00 : f32
    %7 = vector.broadcast %cst_5 : f32 to vector<16x256xf32>
    %8 = arith.maximumf %6, %7 : vector<16x256xf32>
    %9 = arith.truncf %8 : vector<16x256xf32> to vector<16x256xbf16>
    %c0_6 = arith.constant 0 : index
    %c0_7 = arith.constant 0 : index
    %10 = vector.load %arg5[%c0_6, %c0_7] : memref<256x128xbf16, #tpu.memory_space<vmem>>, vector<256x128xbf16>
    %cst_8 = arith.constant dense<0.000000e+00> : vector<16x128xf32>
    %11 = tpu.matmul %9, %10, %cst_8 {dimension_numbers = #tpu.dot_dimension_numbers<[1], [0], [0], [1], [0, 0, 1, 1], [], []>} : vector<16x256xbf16>, vector<256x128xbf16>, vector<16x128xf32> -> vector<16x128xf32>
    %c0_9 = arith.constant 0 : index
    %c0_10 = arith.constant 0 : index
    %12 = vector.load %arg6[%c0_9, %c0_10] : memref<1x128xf32, #tpu.memory_space<vmem>>, vector<1x128xf32>
    %13 = vector.broadcast %12 : vector<1x128xf32> to vector<16x128xf32>
    %14 = arith.addf %11, %13 : vector<16x128xf32>
    %15 = math.tanh %14 : vector<16x128xf32>
    %c0_11 = arith.constant 0 : index
    %c0_12 = arith.constant 0 : index
    %16 = vector.load %arg7[%c0_11, %c0_12] : memref<16x128xf32, #tpu.memory_space<vmem>>, vector<16x128xf32>
    tpu.vector_store %arg7[%c0_11, %c0_12], %15 {strides = array<i32>} : memref<16x128xf32, #tpu.memory_space<vmem>>, vector<16x128xf32>,
    return
  }
  func.func @transform_0(%arg0: i32, %arg1: i32) -> (i32, i32) {
    %c0_i32 = arith.constant 0 : i32
    %c0_i32_0 = arith.constant 0 : i32
    return %arg0, %c0_i32 : i32, i32
  }
  func.func @transform_1(%arg0: i32, %arg1: i32) -> (i32, i32) {
    %c0_i32 = arith.constant 0 : i32
    %c0_i32_0 = arith.constant 0 : i32
    %c0_i32_1 = arith.constant 0 : i32
    return %c0_i32, %c0_i32_0 : i32, i32
  }
  func.func @transform_2(%arg0: i32, %arg1: i32) -> (i32, i32) {
    %c0_i32 = arith.constant 0 : i32
    %c0_i32_0 = arith.constant 0 : i32
    %c0_i32_1 = arith.constant 0 : i32
    return %c0_i32, %c0_i32_0 : i32, i32
  }
  func.func @transform_3(%arg0: i32, %arg1: i32) -> (i32, i32) {
    %c0_i32 = arith.constant 0 : i32
    %c0_i32_0 = arith.constant 0 : i32
    return %c0_i32, %arg1 : i32, i32
  }
  func.func @transform_4(%arg0: i32, %arg1: i32) -> (i32, i32) {
    %c0_i32 = arith.constant 0 : i32
    %c0_i32_0 = arith.constant 0 : i32
    return %c0_i32, %arg1 : i32, i32
  }
  func.func @transform_5(%arg0: i32, %arg1: i32) -> (i32, i32) {
    %c0_i32 = arith.constant 0 : i32
    return %arg0, %arg1 : i32, i32
  }
}

</mosaic_0001>

<bundles_post_ra>
// kernel: tpu_custom_call.1
= control target key start
LH: loop header
LB: loop body
LE: loop exit
PB: predicated region body
PF: predicated region fallthrough
CT: control target
= control target key end

     0   :  { %10 = vsyncpa [#allocation3], 0  ;;  %s584_s0 = inlined_call_operand.hbm [shape: f32[16,32], index: 0, kind: input, shape index: {}]   ;;  %s585_s1 = inlined_call_operand.hbm [shape: bf16[32,256], index: 1, kind: input, shape index: {}]   ;;  %s586_s2 = inlined_call_operand.vmem [shape: f32[1,256], index: 2, kind: input, shape index: {}]   ;;  %s587_s3 = inlined_call_operand.hbm [shape: bf16[256,128], index: 3, kind: input, shape index: {}]   ;;  %s588_s4 = inlined_call_operand.vmem [shape: f32[1,128], index: 4, kind: input, shape index: {}]   ;;  %s589_s5 = inlined_call_operand.hbm [shape: f32[16,128], index: 5, kind: output, shape index: {}]  }
   0x1   :  { %11 = vsyncpa [#allocation6], 0 }
   0x2   :  { %12 = vsyncpa [#allocation4], 0  ;;  %s518_s18 = smov [#allocation5]   ;;  %s519_s20 = smov [#allocation2]  }
   0x3   :  { %s30_s19 = sshll.u32 %s518_s18, 4  ;;  %s18_s21 = sshll.u32 %s519_s20, 4  ;;  %s31_s19 = int_to_ptr.vmem [resolvable:$true] %s30_s19  ;;  %s19_s21 = int_to_ptr.vmem [resolvable:$true] %s18_s21 }
   0x4   :  { %s440_s22 = scalar_lea.vmem %s31_s19, 512  ;;  %p445_p1 = scmp.lt.s32.totalorder %s31_s19, %s31_s19 }
   0x5   :  { %p441_p0 = scmp.ne.s32.totalorder %s31_s19, %s440_s22  ;;  %p446_p2 = scmp.lt.s32.totalorder %s440_s22, %s440_s22 }
   0x7   :  { %p447_p3 = por %p446_p2, %p445_p1 }
   0x9   :  { %p448_p4 = pnand %p447_p3, %p441_p0 }
   0xb   :  { %451 = shalt.err (!%p448_p4)
}
   0xc   :  { %s520_s23 = smov 128   ;;  %s521_s24 = smov 8  }
   0xd   :  { %36 = dma.hbm_to_vmem [thread:$0]  %s585_s1, 512, %s31_s19, [#allocation6], %s520_s23, %s520_s23, %s521_s24  }
   0xe   :  { %s460_s27 = scalar_lea.vmem %s19_s21, 256  ;;  %p465_p6 = scmp.lt.s32.totalorder %s19_s21, %s19_s21 }
   0xf   :  { %p461_p5 = scmp.ne.s32.totalorder %s19_s21, %s460_s27  ;;  %p466_p7 = scmp.lt.s32.totalorder %s460_s27, %s460_s27 }
  0x11   :  { %p467_p8 = por %p466_p7, %p465_p6 }
  0x13   :  { %p468_p9 = pnand %p467_p8, %p461_p5 }
  0x15   :  { %471 = shalt.err (!%p468_p9)
}
  0x16   :  { %24 = dma.hbm_to_vmem [thread:$0]  %s584_s0, 256, %s19_s21, [#allocation3], %s520_s23, %s520_s23, %s521_s24  }
  0x17   :  { %s522_s30 = smov [#allocation7]  }
  0x18   :  { %s44_s6 = sshll.u32 %s522_s30, 4  ;;  %s45_s6 = int_to_ptr.vmem [resolvable:$true] %s44_s6 }
  0x19   :  { %s480_s7 = scalar_lea.vmem %s45_s6, 2048  ;;  %p485_p11 = scmp.lt.s32.totalorder %s45_s6, %s45_s6 }
  0x1a   :  { %p481_p10 = scmp.ne.s32.totalorder %s45_s6, %s480_s7  ;;  %p486_p12 = scmp.lt.s32.totalorder %s480_s7, %s480_s7 }
  0x1c   :  { %p487_p13 = por %p486_p12, %p485_p11 }
  0x1e   :  { %p488_p0 = pnand %p487_p13, %p481_p10 }
  0x20   :  { %491 = shalt.err (!%p488_p0)
}
  0x21   :  { %s523_s1 = smov 64   ;;  %s524_s8 = smov 4  }
  0x22   :  { %50 = dma.hbm_to_vmem [thread:$0]  %s587_s3, 2048, %s45_s6, [#allocation6], %s523_s1, %s523_s1, %s524_s8  }
  0x23   :  { %512 = dma.done.wait [#allocation3], 256  }
  0x24   :  { %513 = vsyncadd [#allocation3], 4294967040 }
  0x25   :  { %514 = dma.done.wait [#allocation6], 2560  }
  0x26   :  { %515 = vsyncadd [#allocation6], 4294964736  ;;  %v525_v0 = vmov 0   ;;  %v406_v1 = vld [vmem:[#allocation5 + $0x14] ss:$8 sps:$4 sm:$0xff]   ;;  %vm102_vm0 = vcmask 261120   ;;  %v72_v24 = vlaneseq }
  0x27   :  { %138 = vmatprep.mubr.bf16.mxu0 %v525_v0  ;;  %v408_v2 = vld [vmem:[#allocation5 + $0x10] ss:$8 sps:$4 sm:$0xff]   ;;  %118 = vmatprep.subr.bf16.mxu0 %v406_v1  ;;  %v409_v3 = vld [vmem:[#allocation5 + $0x4] ss:$8 sps:$4 sm:$0xff]   ;;  %v411_v4 = vld [vmem:[#allocation5] ss:$8 sps:$4 sm:$0xff]  }
  0x28   :  { %v63_v5 = vld [vmem:[#allocation2] sm:$0xff]  ;;  %119 = vmatpush1.bf16.msra.mxu0 %v408_v2  ;;  %v64_v6 = vld [vmem:[#allocation2 + $0x8] sm:$0xff]  ;;  %v416_v12 = vld [vmem:[#allocation7 + $0x68] sm:$0xff]   ;;  %v73_v25 = vshrl.u32 %v72_v24, 7  ;;  %s526_s12 = smov [#allocation8]  }
  0x29   :  { %120 = vmatprep.subr.bf16.mxu0 %v409_v3  ;;  %v412_v7 = vld [vmem:[#allocation7 + $0x78] sm:$0xff]   ;;  %v65_v9 = vpack.c.bf16 %v64_v6, %v63_v5  ;;  %v414_v10 = vld [vmem:[#allocation7 + $0x70] sm:$0xff]   ;;  %v417_v13 = vld [vmem:[#allocation7 + $0x28] sm:$0xff]   ;;  %s340_s13 = sshll.u32 %s526_s12, 4  ;;  %s341_s13 = int_to_ptr.vmem [resolvable:$true] %s340_s13 }
  0x2a   :  { %v413_v8 = vld [vmem:[#allocation7 + $0x38] sm:$0xff]   ;;  %375 = vmatprep.subr.bf16.mxu1 %v412_v7  ;;  %v415_v11 = vld [vmem:[#allocation7 + $0x30] sm:$0xff]   ;;  %v418_v14 = vld [vmem:[#allocation7 + $0x60] sm:$0xff]   ;;  %v78_v26 = vsub.s32 1, %v73_v25  ;;  %v74_v27 = vsub.s32 0, %v73_v25  ;;  %s492_s14 = scalar_lea.vmem %s341_s13, 256  ;;  %p497_p2 = scmp.lt.s32.totalorder %s341_s13, %s341_s13 }
  0x2b   :  { %376 = vmatpush3.bf16.msra.mxu1 %v413_v8  ;;  %v419_v15 = vld [vmem:[#allocation7 + $0x20] sm:$0xff]   ;;  %v420_v16 = vld [vmem:[#allocation7 + $0x58] sm:$0xff]   ;;  %v422_v18 = vld [vmem:[#allocation7 + $0x50] sm:$0xff]   ;;  %p493_p1 = scmp.ne.s32.totalorder %s341_s13, %s492_s14  ;;  %p498_p3 = scmp.lt.s32.totalorder %s492_s14, %s492_s14 }
  0x2c   :  { %121 = vmatpush1.bf16.msra.mxu0 %v411_v4  ;;  %377 = vmatprep.subr.bf16.mxu1 %v414_v10  ;;  %v421_v17 = vld [vmem:[#allocation7 + $0x18] sm:$0xff]   ;;  %v423_v19 = vld [vmem:[#allocation7 + $0x10] sm:$0xff]   ;;  %v424_v20 = vld [vmem:[#allocation7 + $0x48] sm:$0xff]  }
  0x2d   :  { %v425_v21 = vld [vmem:[#allocation7 + $0x8] sm:$0xff]   ;;  %v426_v22 = vld [vmem:[#allocation7 + $0x40] sm:$0xff]   ;;  %v70_v28 = vld [vmem:[%s586_s2] sm:$0x3]  ;;  %p499_p4 = por %p498_p3, %p497_p2 }
  0x2e   :  { %v427_v23 = vld [vmem:[#allocation7] sm:$0xff]   ;;  %v79_v30 = vrot.slane %v70_v28, %v78_v26  ;;  %v75_v31 = vrot.slane %v70_v28, %v74_v27  ;;  %v358_v46 = vld [vmem:[%s588_s4] ss:$0 sm:$0xff] }
  0x2f   :  { %357 = vmatmul.mubr.msk.bf16.vlgmr.msra.gmra.mxu0 %vm102_vm0, %v65_v9  ;;  %378 = vmatpush3.bf16.msra.mxu1 %v415_v11  ;;  %p500_p5 = pnand %p499_p4, %p493_p1 }
  0x30   :  { %379 = vmatprep.subr.bf16.mxu1 %v416_v12 }
  0x33   :  { %380 = vmatpush3.bf16.msra.mxu1 %v417_v13 }
  0x34   :  { %381 = vmatprep.subr.bf16.mxu1 %v418_v14 }
  0x37   :  { %382 = vmatpush3.bf16.msra.mxu1 %v419_v15 }
  0x38   :  { %383 = vmatprep.subr.bf16.mxu1 %v420_v16 }
  0x3b   :  { %384 = vmatpush3.bf16.msra.mxu1 %v421_v17 }
  0x3c   :  { %385 = vmatprep.subr.bf16.mxu1 %v422_v18 }
  0x3f   :  { %386 = vmatpush3.bf16.msra.mxu1 %v423_v19 }
  0x40   :  { %387 = vmatprep.subr.bf16.mxu1 %v424_v20 }
  0x43   :  { %388 = vmatpush3.bf16.msra.mxu1 %v425_v21 }
  0x44   :  { %389 = vmatprep.subr.bf16.mxu1 %v426_v22 }
  0x47   :  { %390 = vmatpush3.bf16.msra.mxu1 %v427_v23 }
  0xef   :  { %v140_v29 = vpop.f32.mrf.mxu0 }
  0xf0   :  { %v141_v36 = vadd.f32 %v140_v29, %v75_v31 }
  0xf1   :  { %v142_v32 = vpop.f32.mrf.mxu0 }
  0xf2   :  { %v143_v34 = vadd.f32 %v142_v32, %v79_v30  ;;  %v149_v42 = vmax.f32 %v141_v36, 0.0 }
  0xf3   :  { %v144_v33 = vpop.f32.mrf.mxu0 }
  0xf4   :  { %v145_v35 = vadd.f32 %v144_v33, %v75_v31  ;;  %v150_v40 = vmax.f32 %v143_v34, 0.0 }
  0xf5   :  { %v146_v37 = vpop.f32.mrf.mxu0 }
  0xf6   :  { %v147_v38 = vadd.f32 %v146_v37, %v79_v30  ;;  %v151_v39 = vmax.f32 %v145_v35, 0.0 }
  0xf8   :  { %v152_v41 = vmax.f32 %v147_v38, 0.0  ;;  %v153_v44 = vpack.c.bf16 %v151_v39, %v149_v42 }
  0xfa   :  { %v154_v43 = vpack.c.bf16 %v152_v41, %v150_v40 }
  0xfc   :  { %322 = vmatprep.mubr.bf16.mxu1 %v154_v43 }
  0xfd   :  { %323 = vmatmul.mubr.bf16.vlgmr.msra.gmra.mxu1 %v153_v44 }
 0x1bd   :  { %v391_v45 = vpop.f32.mrf.mxu1 }
 0x1bf   :  { %v392_v47 = vpop.f32.mrf.mxu1 }
 0x1c0   :  { %v393_v48 = vadd.f32 %v392_v47, %v391_v45 }
 0x1c1   :  { %v394_v49 = vpop.f32.mrf.mxu1 }
 0x1c2   :  { %v325_v50 = vadd.f32 %v393_v48, %v358_v46 }
 0x1c3   :  { %v395_v51 = vpop.f32.mrf.mxu1 }
 0x1c4   :  { %428 = vtanh.f32 %v325_v50  ;;  %v396_v52 = vadd.f32 %v395_v51, %v394_v49 }
 0x1c6   :  { %v328_v53 = vadd.f32 %v396_v52, %v358_v46 }
 0x1c8   :  { %430 = vtanh.f32 %v328_v53 }
 0x1d1   :  { %v429_v54 = vpop.eup %428 }
 0x1d2   :  { %333 = vst [vmem:[#allocation8] sm:$0xff] %v429_v54 }
 0x1d5   :  { %v431_v55 = vpop.eup %430 }
 0x1d6   :  { %334 = vst [vmem:[#allocation8 + $0x8] sm:$0xff] %v431_v55 }
 0x1d7   :  { %503 = shalt.err (!%p500_p5)
}
 0x1d8   :  { %346 = dma.vmem_to_hbm [thread:$0]  %s341_s13, 256, %s589_s5, [#allocation4], %s520_s23, %s520_s23, %s521_s24  }
 0x1d9   :  { %516 = dma.done.wait [#allocation4], 256  }
 0x1da   :  { %517 = vsyncadd [#allocation4], 4294967040 }
 0x1db   :  { %350 = vsyncpa [#allocation3], 1 }
 0x1dc   :  { %351 = vsyncpa [#allocation6], 1 }
 0x1dd   :  { %352 = vsyncpa [#allocation4], 1 }

</bundles_post_ra>
